<compile_context>
chip_gen: v7x
topology: tpu7x:2x2x1
jax: 0.10.0
libtpu: 0.0.40
codegen_flags: <defaults>
</compile_context>

<pallas_src>
import math
import functools

import jax
import jax.numpy as jnp
from jax.experimental import pallas as pl
from jax.experimental.pallas import tpu as pltpu


def _round_up(v, m):
    return ((v + m - 1) // m) * m


def _output_proj_kernel(x_ref, w_ref, b_ref, o_ref, *, wa, n_rows):
    # x_ref: ((H+2)*Wa, 3*C_in) bf16  packed image, row r = h_pad*Wa + w
    # w_ref: (3, 3*C_in, C_pad) bf16  conv taps grouped by ky (kx folded into K)
    # b_ref: (1, C_pad)         f32   bias (padded to 128 lanes)
    # o_ref: (n_rows, C_pad)          output rows, row r = h*Wa + w
    #
    # Row starts 0, Wa, 2*Wa are multiples of 16 -> sublane-aligned bf16 slices
    # (no relayout copies).  f32 accumulation straight off the MXU; no scratch
    # zero-fill; bias folded into the single lane-dense store.
    acc = jnp.dot(x_ref[pl.ds(0 * wa, n_rows), :], w_ref[0],
                  preferred_element_type=jnp.float32)
    acc += jnp.dot(x_ref[pl.ds(1 * wa, n_rows), :], w_ref[1],
                   preferred_element_type=jnp.float32)
    acc += jnp.dot(x_ref[pl.ds(2 * wa, n_rows), :], w_ref[2],
                   preferred_element_type=jnp.float32)
    o_ref[...] = (acc + b_ref[...]).astype(o_ref.dtype)


@jax.jit
def output_proj_pallas(x, weight, bias):
    """x: (B, L, C_in), L=H*W square; weight: (C_out, C_in, 3, 3); bias: (C_out,)."""
    B, L, C_in = x.shape
    H = int(math.isqrt(L))
    W = H
    assert H * W == L, "OutputProj expects a square token grid"
    C_out = weight.shape[0]
    assert weight.shape == (C_out, C_in, 3, 3)

    LANE = 128
    SUB = 16                                   # bf16 sublane packing
    C_pad = _round_up(C_out, LANE)             # lane-dense (unmasked) stores
    Wa = _round_up(W, SUB)                     # aligned row width
    Hp = H + 2
    K = 3 * C_in                               # kx folded into the contraction
    n_rows = H * Wa                            # output rows per image (mult of 16)
    R = Hp * Wa                                # packed input rows per image

    # --- single fused wrapper pass: NHWC view -> bf16 -> pad -> kx im2col ----
    # (B, L, C) is already NHWC once L splits into (H, W): no transpose needed.
    xb = x.reshape(B, H, W, C_in).astype(jnp.bfloat16)
    x_pad = jnp.pad(xb, ((0, 0), (1, 1), (1, 1), (0, 0)))          # (B, Hp, W+2, C)
    # Stack the 3 horizontal neighbours into channels: K = 3*C_in.
    x_packed = jnp.concatenate(
        [x_pad[:, :, kx:kx + W, :] for kx in range(3)], axis=-1)   # (B, Hp, W, K)
    if Wa != W:
        x_packed = jnp.pad(x_packed, ((0, 0), (0, 0), (0, Wa - W), (0, 0)))
    x_flat = x_packed.reshape(B, R, K)

    # (C_out, C_in, ky, kx) -> (ky, kx, C_in, C_out) -> (ky, 3*C_in, C_pad) bf16
    # Channel order of the merged (kx, C_in) axis matches x_packed's concat order.
    w_taps = jnp.transpose(weight, (2, 3, 1, 0)).reshape(3, K, C_out)
    w_taps = jnp.pad(w_taps, ((0, 0), (0, 0), (0, C_pad - C_out))).astype(jnp.bfloat16)
    b_pad = jnp.pad(bias, (0, C_pad - C_out)).reshape(1, C_pad).astype(jnp.float32)

    kernel = functools.partial(_output_proj_kernel, wa=Wa, n_rows=n_rows)

    out = pl.pallas_call(
        kernel,
        out_shape=jax.ShapeDtypeStruct((B * n_rows, C_pad), x.dtype),
        grid_spec=pltpu.PrefetchScalarGridSpec(
            num_scalar_prefetch=0,
            grid=(B,),
            in_specs=[
                # one packed image per grid step (batch dim squeezed)
                pl.BlockSpec((None, R, K), lambda bi: (bi, 0, 0)),
                # weights / bias: constant index_map -> fetched once, VMEM-resident
                pl.BlockSpec((3, K, C_pad), lambda bi: (0, 0, 0)),
                pl.BlockSpec((1, C_pad), lambda bi: (0, 0)),
            ],
            out_specs=pl.BlockSpec((n_rows, C_pad), lambda bi: (bi, 0)),
        ),
        compiler_params=pltpu.CompilerParams(
            dimension_semantics=("parallel",),        # shard batch across TCs
            vmem_limit_bytes=64 * 1024 * 1024,        # headroom beyond 16/32 MiB defaults
        ),
    )(x_flat, w_taps, b_pad)

    # Slice away the Wa>W junk columns / C_pad>C_out lanes, restore NCHW.
    out = out.reshape(B, H, Wa, C_pad)[:, :, :W, :C_out]
    # NOTE: if the downstream consumer accepts NHWC, return `out` directly and
    # skip this transpose (saves one full HBM pass).
    return jnp.transpose(out, (0, 3, 1, 2))           # (B, C_out, H, W)


def output_proj_reference(x, weight, bias):
    B, L, C = x.shape
    H = W = int(math.isqrt(L))
    x_nchw = jnp.transpose(x, (0, 2, 1)).reshape(B, C, H, W)
    y = jax.lax.conv_general_dilated(
        x_nchw, weight, window_strides=(1, 1), padding=((1, 1), (1, 1)),
        dimension_numbers=("NCHW", "OIHW", "NCHW"),
        precision=jax.lax.Precision.HIGHEST)
    return y + bias.reshape(1, -1, 1, 1)


if __name__ == "__main__":
    key = jax.random.PRNGKey(0)
    B = 2
    H = W = 16
    L = H * W
    in_channel, out_channel = 64, 32          # module defaults

    kx, kw, kb = jax.random.split(key, 3)
    x = jax.random.normal(kx, (B, L, in_channel), dtype=jnp.float32)

    # PyTorch Conv2d-like uniform init bounds (deterministic).
    fan_in = in_channel * 3 * 3
    bound = 1.0 / math.sqrt(fan_in)
    weight = jax.random.uniform(kw, (out_channel, in_channel, 3, 3),
                                minval=-bound, maxval=bound, dtype=jnp.float32)
    bias = jax.random.uniform(kb, (out_channel,),
                              minval=-bound, maxval=bound, dtype=jnp.float32)

    y = output_proj_pallas(x, weight, bias)
    y = jax.block_until_ready(y)
    assert y.shape == (B, out_channel, H, W)

    # Tight check against a reference fed with bf16-rounded operands
    # (kernel does exact bf16 products + f32 accumulation).
    y_ref_bf16 = output_proj_reference(
        x.astype(jnp.bfloat16).astype(jnp.float32),
        weight.astype(jnp.bfloat16).astype(jnp.float32), bias)
    assert jnp.allclose(y, y_ref_bf16, atol=5e-3, rtol=5e-3), "mismatch vs bf16 reference"

    # Loose sanity check against the full-f32 reference (bf16 operand rounding).
    y_ref_f32 = output_proj_reference(x, weight, bias)
    assert jnp.allclose(y, y_ref_f32, atol=5e-2, rtol=5e-2), "mismatch vs f32 reference"

    print("KERNEL_OK")
</pallas_src>

<mosaic_0001>
module attributes {stable_mosaic.version = 11 : i64} {
  func.func @_output_proj_kernel(%arg0: i32, %arg1: memref<1x288x192xbf16, #tpu.memory_space<vmem>>, %arg2: memref<3x192x128xbf16, #tpu.memory_space<vmem>>, %arg3: memref<1x128xf32, #tpu.memory_space<vmem>>, %arg4: memref<256x128xf32, #tpu.memory_space<vmem>>) attributes {dimension_semantics = [#tpu.dimension_semantics<parallel>], iteration_bounds = array<i64: 2>, scalar_prefetch = 0 : i64, scratch_operands = 0 : i64, tpu.core_type = #tpu.core_type<tc>, window_params = [{transform_indices = @transform_0, window_bounds = array<i64: 1, 288, 192>}, {pipeline_mode = #tpu.pipeline_mode<synchronous>, transform_indices = @transform_1, window_bounds = array<i64: 3, 192, 128>}, {pipeline_mode = #tpu.pipeline_mode<synchronous>, transform_indices = @transform_2, window_bounds = array<i64: 1, 128>}, {transform_indices = @transform_3, window_bounds = array<i64: 256, 128>}]} {
    %c0 = arith.constant 0 : index
    %c0_0 = arith.constant 0 : index
    %c0_1 = arith.constant 0 : index
    %0 = vector.load %arg1[%c0, %c0_0, %c0_1] : memref<1x288x192xbf16, #tpu.memory_space<vmem>>, vector<1x256x192xbf16>
    %1 = vector.shape_cast %0 : vector<1x256x192xbf16> to vector<256x192xbf16>
    %c0_2 = arith.constant 0 : index
    %c0_3 = arith.constant 0 : index
    %c0_4 = arith.constant 0 : index
    %2 = vector.load %arg2[%c0_2, %c0_3, %c0_4] : memref<3x192x128xbf16, #tpu.memory_space<vmem>>, vector<1x192x128xbf16>
    %3 = vector.shape_cast %2 : vector<1x192x128xbf16> to vector<192x128xbf16>
    %cst = arith.constant dense<0.000000e+00> : vector<256x128xf32>
    %4 = tpu.matmul %1, %3, %cst {dimension_numbers = #tpu.dot_dimension_numbers<[1], [0], [0], [1], [0, 0, 1, 1], [], []>} : vector<256x192xbf16>, vector<192x128xbf16>, vector<256x128xf32> -> vector<256x128xf32>
    %c0_5 = arith.constant 0 : index
    %c16 = arith.constant 16 : index
    %c0_6 = arith.constant 0 : index
    %5 = vector.load %arg1[%c0_5, %c16, %c0_6] : memref<1x288x192xbf16, #tpu.memory_space<vmem>>, vector<1x256x192xbf16>
    %6 = vector.shape_cast %5 : vector<1x256x192xbf16> to vector<256x192xbf16>
    %c1 = arith.constant 1 : index
    %c0_7 = arith.constant 0 : index
    %c0_8 = arith.constant 0 : index
    %7 = vector.load %arg2[%c1, %c0_7, %c0_8] : memref<3x192x128xbf16, #tpu.memory_space<vmem>>, vector<1x192x128xbf16>
    %8 = vector.shape_cast %7 : vector<1x192x128xbf16> to vector<192x128xbf16>
    %cst_9 = arith.constant dense<0.000000e+00> : vector<256x128xf32>
    %9 = tpu.matmul %6, %8, %cst_9 {dimension_numbers = #tpu.dot_dimension_numbers<[1], [0], [0], [1], [0, 0, 1, 1], [], []>} : vector<256x192xbf16>, vector<192x128xbf16>, vector<256x128xf32> -> vector<256x128xf32>
    %10 = arith.addf %4, %9 : vector<256x128xf32>
    %c0_10 = arith.constant 0 : index
    %c32 = arith.constant 32 : index
    %c0_11 = arith.constant 0 : index
    %11 = vector.load %arg1[%c0_10, %c32, %c0_11] : memref<1x288x192xbf16, #tpu.memory_space<vmem>>, vector<1x256x192xbf16>
    %12 = vector.shape_cast %11 : vector<1x256x192xbf16> to vector<256x192xbf16>
    %c2 = arith.constant 2 : index
    %c0_12 = arith.constant 0 : index
    %c0_13 = arith.constant 0 : index
    %13 = vector.load %arg2[%c2, %c0_12, %c0_13] : memref<3x192x128xbf16, #tpu.memory_space<vmem>>, vector<1x192x128xbf16>
    %14 = vector.shape_cast %13 : vector<1x192x128xbf16> to vector<192x128xbf16>
    %cst_14 = arith.constant dense<0.000000e+00> : vector<256x128xf32>
    %15 = tpu.matmul %12, %14, %cst_14 {dimension_numbers = #tpu.dot_dimension_numbers<[1], [0], [0], [1], [0, 0, 1, 1], [], []>} : vector<256x192xbf16>, vector<192x128xbf16>, vector<256x128xf32> -> vector<256x128xf32>
    %16 = arith.addf %10, %15 : vector<256x128xf32>
    %c0_15 = arith.constant 0 : index
    %c0_16 = arith.constant 0 : index
    %17 = vector.load %arg3[%c0_15, %c0_16] : memref<1x128xf32, #tpu.memory_space<vmem>>, vector<1x128xf32>
    %18 = vector.broadcast %17 : vector<1x128xf32> to vector<256x128xf32>
    %19 = arith.addf %16, %18 : vector<256x128xf32>
    %c0_17 = arith.constant 0 : index
    %c0_18 = arith.constant 0 : index
    %20 = vector.load %arg4[%c0_17, %c0_18] : memref<256x128xf32, #tpu.memory_space<vmem>>, vector<256x128xf32>
    tpu.vector_store %arg4[%c0_17, %c0_18], %19 {strides = array<i32>} : memref<256x128xf32, #tpu.memory_space<vmem>>, vector<256x128xf32>,
    return
  }
  func.func @transform_0(%arg0: i32) -> (i32, i32, i32) {
    %c0_i32 = arith.constant 0 : i32
    %c0_i32_0 = arith.constant 0 : i32
    %c0_i32_1 = arith.constant 0 : i32
    return %arg0, %c0_i32, %c0_i32_0 : i32, i32, i32
  }
  func.func @transform_1(%arg0: i32) -> (i32, i32, i32) {
    %c0_i32 = arith.constant 0 : i32
    %c0_i32_0 = arith.constant 0 : i32
    %c0_i32_1 = arith.constant 0 : i32
    %c0_i32_2 = arith.constant 0 : i32
    return %c0_i32, %c0_i32_0, %c0_i32_1 : i32, i32, i32
  }
  func.func @transform_2(%arg0: i32) -> (i32, i32) {
    %c0_i32 = arith.constant 0 : i32
    %c0_i32_0 = arith.constant 0 : i32
    %c0_i32_1 = arith.constant 0 : i32
    return %c0_i32, %c0_i32_0 : i32, i32
  }
  func.func @transform_3(%arg0: i32) -> (i32, i32) {
    %c0_i32 = arith.constant 0 : i32
    %c0_i32_0 = arith.constant 0 : i32
    return %arg0, %c0_i32 : i32, i32
  }
}

</mosaic_0001>

<bundles_post_ra>
// kernel: output_proj_pallas.1
= control target key start
LH: loop header
LB: loop body
LE: loop exit
PB: predicated region body
PF: predicated region fallthrough
CT: control target
= control target key end

     0   :  { %8 = vsyncpa [#allocation3], 0  ;;  %s2876_s0 = inlined_call_operand.hbm [shape: bf16[2,288,192], index: 0, kind: input, shape index: {}]   ;;  %s2877_s1 = inlined_call_operand.hbm [shape: bf16[3,192,128], index: 1, kind: input, shape index: {}]   ;;  %s2878_s2 = inlined_call_operand.hbm [shape: f32[1,128], index: 2, kind: input, shape index: {}]   ;;  %s2879_s3 = inlined_call_operand.hbm [shape: f32[512,128], index: 3, kind: output, shape index: {}]  }
   0x1   :  { %10 = vsyncpa [#allocation3 + $0x1], 0 }
   0x2   :  { %11 = vsyncpa [#allocation6], 0 }
   0x3   :  { %12 = vsyncpa [#allocation4], 0 }
   0x4   :  { %14 = vsyncpa [#allocation4 + $0x1], 0  ;;  %s2210_s12 = smov 0   ;;  %s2212_s13 = smov 0  }
   0x5   :  { %s2214_s14 = smov 0   ;;  %s2216_s15 = smov 0  }
   0x6 LB: > { %s2231_s16 = sadd.s32 4294967295, %s2177_s15   ;;  %s1663_s17 = sadd.s32 4294967294, %s2177_s15   ;;  %s2177_s15 = sphi %s2216_s15, %s2899_s15   ;;  %s2173_s14 = sphi %s2214_s14, %s2898_s14   ;;  %s2169_s13 = sphi %s2212_s13, %s2897_s13   ;;  %s2165_s12 = sphi %s2210_s12, %s2896_s12  }
   0x7   : > { %p40_p0 = scmp.ne.s32.totalorder %s2169_s13, %s2165_s12  ;;  %p2880_p1 = scmp.eq.s32.totalorder %s2231_s16, 0 }
   0x8   : > { %p112_p3 = scmp.eq.s32.totalorder %s1663_s17, 1  ;;  %p1664_p5 = scmp.ge.s32.totalorder %s2177_s15, 1 }
   0x9   : > { %p2240_p4 = por %p2880_p1, %p40_p0  ;;  %p119_p7 = scmp.lt.s32.totalorder %s2177_s15, 3 }
   0xa   : > { %p2245_p6 = por %p112_p3, %p40_p0  ;;  %s2179_s21 = smov [#allocation5]  }
   0xb   : > { %s2883_s18 = scalar_select %p2240_p4, 1, 0 }
   0xc   : > { %s2884_s19 = scalar_select %p2245_p6, 1, 0 }
   0xd   : > { %p2250_p8 = pnand %p1664_p5, %p119_p7  ;;  %s131_s22 = sshll.u32 %s2179_s21, 4  ;;  %s2254_s22 = int_to_ptr.vmem [resolvable:$true] %s131_s22 }
   0xe   : > { %s2180_s24 = smov [#allocation7]   ;;  %s2021_s28 = scalar_lea.hbm %s2877_s1, 4608 }
   0xf   : > { %p1869_p9 = pneg %p2250_p8  ;;  %s145_s25 = sshll.u32 %s2180_s24, 4  ;;  %s2265_s25 = int_to_ptr.vmem [resolvable:$true] %s145_s25 }
  0x10   : > { %p2022_p12 = scmp.ne.s32.totalorder %s2877_s1, %s2021_s28  ;;  %p2028_p5 = scmp.lt.u32.totalorder %s2021_s28, %s2877_s1 }
  0x11   : > { %p2261_p11 = pnand %p1869_p9, %p2880_p1 }
  0x13   : > { %p2023_p13 = pneg %p2261_p11 }
  0x15   : > { %p2024_p0 = pnand %p2023_p13, %p2022_p12 }
  0x17   : > { %p2025_p3 = pneg %p2024_p0 }
  0x19   : > { %p2030_p7 = pnand %p2028_p5, %p2025_p3 }
  0x1b   : > { %2033 = shalt.err (!%p2030_p7)
}
  0x1c   : > { %s2034_s6 = scalar_lea.vmem %s2254_s22, 4608  ;;  %p2042_p2 = scmp.lt.s32.totalorder %s2254_s22, %s2254_s22 }
  0x1d   : > { %p2035_p9 = scmp.ne.s32.totalorder %s2254_s22, %s2034_s6  ;;  %p2043_p12 = scmp.lt.s32.totalorder %s2034_s6, %s2034_s6 }
  0x1f   : > { %p2037_p10 = pnand %p2035_p9, %p2023_p13  ;;  %p2044_p0 = por %p2043_p12, %p2042_p2 }
  0x21   : > { %p2038_p1 = pneg %p2037_p10 }
  0x23   : > { %p2045_p6 = pnand %p2044_p0, %p2038_p1 }
  0x25   : > { %2048 = shalt.err (!%p2045_p6)
}
  0x26   : > { %s2181_s7 = smov 64   ;;  %s2182_s8 = smov 4  }
  0x27   : > { %1872 = dma.hbm_to_vmem [thread:$0]  (!%p2261_p11), %s2877_s1, 4608, %s2254_s22, [#allocation6], %s2181_s7, %s2181_s7, %s2182_s8  }
  0x28   : > { %s2049_s21 = scalar_lea.hbm %s2878_s2, 16 }
  0x29   : > { %p2050_p2 = scmp.ne.s32.totalorder %s2878_s2, %s2049_s21  ;;  %p2056_p10 = scmp.lt.u32.totalorder %s2049_s21, %s2878_s2 }
  0x2b   : > { %p2052_p1 = pnand %p2050_p2, %p2023_p13 }
  0x2d   : > { %p2053_p6 = pneg %p2052_p1 }
  0x2f   : > { %p2058_p3 = pnand %p2056_p10, %p2053_p6 }
  0x31   : > { %2061 = shalt.err (!%p2058_p3)
}
  0x32   : > { %s2062_s22 = scalar_lea.vmem %s2265_s25, 16  ;;  %s2069_s29 = scalar_lea.vmem %s2265_s25, 32 }
  0x33   : > { %p2063_p5 = scmp.ne.s32.totalorder %s2265_s25, %s2062_s22  ;;  %p2070_p12 = scmp.lt.s32.totalorder %s2265_s25, %s2265_s25 }
  0x34   : > { %p2071_p0 = scmp.lt.s32.totalorder %s2069_s29, %s2062_s22 }
  0x35   : > { %p2065_p7 = pnand %p2063_p5, %p2023_p13 }
  0x36   : > { %p2072_p2 = por %p2071_p0, %p2070_p12 }
  0x37   : > { %p2066_p9 = pneg %p2065_p7 }
  0x39   : > { %p2073_p1 = pnand %p2072_p2, %p2066_p9 }
  0x3b   : > { %2076 = shalt.err (!%p2073_p1)
}
  0x3c   : > { %1875 = dma.hbm_to_vmem [thread:$0]  (!%p2261_p11), %s2878_s2, 16, %s2265_s25, [#allocation6]  }
  0x3d   : > { %s2321_s5 = sadd.s32 1, %s2177_s15   ;;  %s27_s23 = sadd.s32 1, %s2173_s14 }
  0x3e   : > { %s24_s6 = ssub.s32 %s2177_s15, %s2321_s5  ;;  %p34_p13 = scmp.ne.s32.totalorder %s2173_s14, %s2169_s13 }
  0x3f   : > { %p25_p6 = scmp.eq.s32.totalorder %s24_s6, 0  ;;  %p35_p10 = scmp.eq.s32.totalorder %s2177_s15, 0 }
  0x40   : > { %p2887_p3 = scmp.eq.s32.totalorder %s2231_s16, 1  ;;  %p1886_p7 = scmp.lt.s32.totalorder %s2177_s15, 2 }
  0x41   : > { %s2337_s8 = scalar_select %p25_p6, %s2173_s14, %s27_s23  }
  0x42   : > { %p2331_p5 = por %p2887_p3, %p34_p13  ;;  %p36_p9 = por %p35_p10, %p34_p13 }
  0x43   : > { %s156_s9 = sand.u32 1, %s2173_s14   ;;  %s1855_s25 = smul.u32 4608, %s2177_s15 }
  0x44   : > { %s2888_s7 = scalar_select %p2331_p5, 1, 0 }
  0x45   : > { %s1854_s10 = smul.u32 288, %s156_s9  ;;  %p2341_p11 = pnand %p1886_p7, %p36_p9 }
  0x46   : > { %s2348_s24 = scalar_lea.hbm %s2876_s0, %s1855_s25  ;;  %s2352_s28 = scalar_lea.sflag [#allocation3], %s156_s9 }
  0x47   : > { %s160_s26 = scalar_lea.vmem [#allocation2], %s1854_s10  ;;  %s2077_s22 = scalar_lea.hbm %s2348_s24, 4608 }
  0x48   : > { %s167_s27 = sshll.u32 %s160_s26, 4  ;;  %p2078_p12 = scmp.ne.s32.totalorder %s2348_s24, %s2077_s22  ;;  %s2350_s27 = int_to_ptr.vmem [resolvable:$true] %s167_s27 }
  0x49   : > { %p2079_p0 = pneg %p2341_p11  ;;  %s2082_s4 = scalar_lea.hbm %s2876_s0, 9216 }
  0x4a   : > { %p2083_p13 = scmp.lt.u32.totalorder %s2348_s24, %s2876_s0  ;;  %p2084_p6 = scmp.lt.u32.totalorder %s2082_s4, %s2077_s22 }
  0x4b   : > { %p2080_p2 = pnand %p2079_p0, %p2078_p12  ;;  %p2086_p3 = scmp.lt.u32.totalorder %s2077_s22, %s2348_s24 }
  0x4c   : > { %p2085_p10 = por %p2084_p6, %p2083_p13 }
  0x4d   : > { %p2081_p1 = pneg %p2080_p2 }
  0x4e   : > { %p2087_p7 = por %p2086_p3, %p2085_p10 }
  0x50   : > { %p2088_p9 = pnand %p2087_p7, %p2081_p1 }
  0x52   : > { %2091 = shalt.err (!%p2088_p9)
}
  0x53   : > { %s2092_s9 = scalar_lea.vmem %s2350_s27, 4608  ;;  %s2183_s10 = smov [#allocation2]  }
  0x54   : > { %p2093_p12 = scmp.ne.s32.totalorder %s2350_s27, %s2092_s9  ;;  %s2097_s25 = sshll.u32 %s2183_s10, 4  ;;  %s2098_s25 = int_to_ptr.vmem [resolvable:$false] %s2097_s25 }
  0x55   : > { %s2099_s17 = scalar_lea.vmem %s2098_s25, 9216  ;;  %p2100_p4 = scmp.lt.s32.totalorder %s2350_s27, %s2098_s25 }
  0x56   : > { %p2095_p2 = pnand %p2093_p12, %p2079_p0  ;;  %p2101_p13 = scmp.lt.s32.totalorder %s2099_s17, %s2092_s9 }
  0x58   : > { %p2096_p5 = pneg %p2095_p2  ;;  %p2102_p6 = por %p2101_p13, %p2100_p4 }
  0x5a   : > { %p2103_p10 = pnand %p2102_p6, %p2096_p5 }
  0x5c   : > { %2106 = shalt.err (!%p2103_p10)
}
  0x5d   : > { %s2184_s21 = smov 128   ;;  %s2185_s26 = smov 8  }
  0x5e   : > { %1879 = dma.hbm_to_vmem [thread:$0]  (!%p2341_p11), %s2348_s24, 4608, %s2350_s27, %s2352_s28, %s2184_s21, %s2184_s21, %s2185_s26  }
  0x5f   : > { %179 = sbr.rel (%p2250_p8) target bundleno = 574 (0x23e), region = 32  ;;  %s2383_s22 = sand.u32 (!%p2250_p8), 1, %s2169_s13  }
  0x60   : > { %s1856_s29 = smul.u32 (!%p2250_p8), 288, %s2383_s22  ;;  %s182_s30 = scalar_lea.sflag (!%p2250_p8), [#allocation3], %s2383_s22 }
  0x61   : > { %p2890_p4 = scmp.ne.s32.totalorder (!%p2250_p8), %s2883_s18, 0 }
  0x62   : > { %s2387_s4 = scalar_lea.vmem (!%p2250_p8), [#allocation2], %s1856_s29 }
  0x66   : > { %2152 = dma.done.wait (%p2890_p4), %s182_s30, 4608  }
  0x67   : > { %2154 = vsyncadd (%p2890_p4), %s182_s30, 4294962688  ;;  %p2891_p5 = scmp.eq.s32.totalorder %s2231_s16, 0 }
  0x69   : > { %2156 = dma.done.wait (%p2891_p5), [#allocation6], 4624   ;;  %p2892_p8 = pmov %p2891_p5 }
  0x6a   : > { %v2186_v0 = vmov 0   ;;  %v1931_v1 = vld [vmem:[#allocation5 + $0x60] sm:$0xff]   ;;  %v1932_v2 = vld [vmem:[#allocation5 + $0x68] sm:$0xff]   ;;  %v1933_v3 = vld [vmem:[#allocation5 + $0x70] sm:$0xff]   ;;  %vm517_vm0 = vcmask 523264   ;;  %s1672_s18 = sshll.u32 %s2383_s22, 8 }
  0x6b   : > { %2158 = vsyncadd (%p2892_p8), [#allocation6], 4294962672  ;;  %566 = vmatprep.subr.bf16.mxu0 %v2186_v0  ;;  %1830 = vmatprep.subr.bf16.mxu1 %v2186_v0  ;;  %v1934_v4 = vld [vmem:[#allocation5 + $0x78] sm:$0xff]   ;;  %v1935_v6 = vld [vmem:[#allocation5 + $0x80] sm:$0xff]   ;;  %s2730_s20 = scalar_lea.vmem [#allocation8], %s1672_s18  ;;  %s1829_s11 = sshll.u32 %s2231_s16, 12 }
  0x6c   : > { %567 = vmatpush1.bf16.msra.mxu0 %v1931_v1  ;;  %1842 = vmatpush1.bf16.msra.mxu1 %v1931_v1  ;;  %v2406_v5 = vld [vmem:[%s2387_s4 + $0x14] ss:$8 sps:$4 sm:$0xff]   ;;  %v1936_v8 = vld [vmem:[#allocation5 + $0x88] sm:$0xff]   ;;  %v1939_v11 = vld [vmem:[#allocation5 + $0xa0] sm:$0xff]   ;;  %s1571_s24 = sshll.u32 %s2730_s20, 4  ;;  %s2827_s23 = scalar_lea.hbm %s2879_s3, %s1829_s11  ;;  %s2829_s24 = int_to_ptr.vmem [resolvable:$true] %s1571_s24 }
  0x6d   : > { %568 = vmatprep.subr.bf16.mxu0 %v2186_v0  ;;  %1831 = vmatprep.subr.bf16.mxu1 %v2186_v0  ;;  %v2409_v7 = vld [vmem:[%s2387_s4 + $0x94] ss:$8 sps:$4 sm:$0xff]   ;;  %v1940_v12 = vld [vmem:[#allocation5 + $0xa8] sm:$0xff]   ;;  %v2432_v15 = vld [vmem:[%s2387_s4 + $0x10] ss:$8 sps:$4 sm:$0xff]   ;;  %s1558_s6 = scalar_lea.sflag [#allocation4], %s2383_s22 }
  0x6e   : > { %1717 = vmatprep.mubr.msk.bf16.mxu0 %vm517_vm0, %v2406_v5  ;;  %1725 = vmatprep.mubr.msk.bf16.mxu1 %vm517_vm0, %v2409_v7  ;;  %v1937_v9 = vld [vmem:[#allocation5 + $0x90] sm:$0xff]   ;;  %v1938_v10 = vld [vmem:[#allocation5 + $0x98] sm:$0xff]   ;;  %v1949_v17 = vld [vmem:[#allocation5] sm:$0xff]   ;;  %s2107_s16 = scalar_lea.vmem %s2829_s24, 4096  ;;  %p2893_p0 = scmp.ne.s32.totalorder %s2888_s7, 0 }
  0x6f   : > { %v1941_v13 = vld [vmem:[#allocation5 + $0xb0] sm:$0xff]   ;;  %v1942_v14 = vld [vmem:[#allocation5 + $0xb8] sm:$0xff]   ;;  %v1950_v18 = vld [vmem:[#allocation5 + $0xc0] sm:$0xff]   ;;  %p2108_p11 = scmp.ne.s32.totalorder %s2829_s24, %s2107_s16  ;;  %s2187_s9 = smov [#allocation8]  }
  0x70   : > { %569 = vmatpush1.bf16.msra.mxu0 %v1932_v2  ;;  %1843 = vmatpush1.bf16.msra.mxu1 %v1932_v2  ;;  %v2435_v16 = vld [vmem:[%s2387_s4 + $0x90] ss:$8 sps:$4 sm:$0xff]   ;;  %v2440_v19 = vld [vmem:[%s2387_s4 + $0x24] ss:$8 sps:$4 sm:$0xff]   ;;  %v2451_v23 = vld [vmem:[%s2387_s4 + $0x20] ss:$8 sps:$4 sm:$0xff]  }
  0x71   : > { %570 = vmatprep.subr.bf16.mxu0 %v2186_v0  ;;  %1832 = vmatprep.subr.bf16.mxu1 %v2186_v0  ;;  %v2443_v20 = vld [vmem:[%s2387_s4 + $0xa4] ss:$8 sps:$4 sm:$0xff]   ;;  %v2456_v24 = vld [vmem:[%s2387_s4 + $0xa0] ss:$8 sps:$4 sm:$0xff]   ;;  %v1959_v25 = vld [vmem:[#allocation5 + $0x10] sm:$0xff]   ;;  %p2109_p1 = pnand %p2108_p11, %p2893_p0  ;;  %s2111_s10 = sshll.u32 %s2187_s9, 4  ;;  %s2112_s10 = int_to_ptr.vmem [resolvable:$false] %s2111_s10 }
  0x72   : > { %v1955_v21 = vld [vmem:[#allocation5 + $0x8] sm:$0xff]   ;;  %v1960_v26 = vld [vmem:[#allocation5 + $0xd0] sm:$0xff]   ;;  %v1967_v29 = vld [vmem:[#allocation5 + $0x18] sm:$0xff]   ;;  %s2113_s25 = scalar_lea.vmem %s2112_s10, 8192  ;;  %p2114_p7 = scmp.lt.s32.totalorder %s2829_s24, %s2112_s10 }
  0x73   : > { %v1958_v22 = vld [vmem:[#allocation5 + $0xc8] sm:$0xff]   ;;  %v2460_v27 = vld [vmem:[%s2387_s4 + $0x34] ss:$8 sps:$4 sm:$0xff]   ;;  %v2476_v31 = vld [vmem:[%s2387_s4 + $0x30] ss:$8 sps:$4 sm:$0xff]   ;;  %p2110_p3 = pneg %p2109_p1  ;;  %p2115_p9 = scmp.lt.s32.totalorder %s2113_s25, %s2107_s16 }
  0x74   : > { %571 = vmatpush1.bf16.msra.mxu0 %v1933_v3  ;;  %1844 = vmatpush1.bf16.msra.mxu1 %v1933_v3  ;;  %v2465_v28 = vld [vmem:[%s2387_s4 + $0xb4] ss:$8 sps:$4 sm:$0xff]   ;;  %v2479_v32 = vld [vmem:[%s2387_s4 + $0xb0] ss:$8 sps:$4 sm:$0xff]   ;;  %v2482_v33 = vld [vmem:[%s2387_s4 + $0x44] ss:$8 sps:$4 sm:$0xff]  }
  0x75   : > { %572 = vmatprep.subr.bf16.mxu0 %v2186_v0  ;;  %1833 = vmatprep.subr.bf16.mxu1 %v2186_v0  ;;  %v1968_v30 = vld [vmem:[#allocation5 + $0xd8] sm:$0xff]   ;;  %v2485_v34 = vld [vmem:[%s2387_s4 + $0xc4] ss:$8 sps:$4 sm:$0xff]   ;;  %v2498_v39 = vld [vmem:[%s2387_s4 + $0x40] ss:$8 sps:$4 sm:$0xff]   ;;  %p2116_p12 = por %p2115_p9, %p2114_p7 }
  0x76   : > { %v1973_v35 = vld [vmem:[#allocation5 + $0x20] sm:$0xff]   ;;  %v1977_v37 = vld [vmem:[#allocation5 + $0x28] sm:$0xff]   ;;  %v2504_v41 = vld [vmem:[%s2387_s4 + $0x54] ss:$8 sps:$4 sm:$0xff]  }
  0x77   : > { %v1976_v36 = vld [vmem:[#allocation5 + $0xe0] sm:$0xff]   ;;  %v1978_v38 = vld [vmem:[#allocation5 + $0xe8] sm:$0xff]   ;;  %v2507_v42 = vld [vmem:[%s2387_s4 + $0xd4] ss:$8 sps:$4 sm:$0xff]   ;;  %p2117_p2 = pnand %p2116_p12, %p2110_p3 }
  0x78   : > { %573 = vmatpush1.bf16.msra.mxu0 %v1934_v4  ;;  %1845 = vmatpush1.bf16.msra.mxu1 %v1934_v4  ;;  %v2501_v40 = vld [vmem:[%s2387_s4 + $0xc0] ss:$8 sps:$4 sm:$0xff]   ;;  %v1985_v43 = vld [vmem:[#allocation5 + $0x30] sm:$0xff]   ;;  %v1991_v45 = vld [vmem:[#allocation5 + $0x38] sm:$0xff]  }
  0x79   : > { %574 = vmatprep.subr.bf16.mxu0 %v2186_v0  ;;  %1834 = vmatprep.subr.bf16.mxu1 %v2186_v0  ;;  %v1986_v44 = vld [vmem:[#allocation5 + $0xf0] sm:$0xff]   ;;  %v1994_v46 = vld [vmem:[#allocation5 + $0xf8] sm:$0xff]   ;;  %v2526_v49 = vld [vmem:[%s2387_s4 + $0x64] ss:$8 sps:$4 sm:$0xff]  }
  0x7a   : > { %v2520_v47 = vld [vmem:[%s2387_s4 + $0x50] ss:$8 sps:$4 sm:$0xff]   ;;  %v2529_v50 = vld [vmem:[%s2387_s4 + $0xe4] ss:$8 sps:$4 sm:$0xff]   ;;  %v1992_v55 = vld [vmem:[%s2387_s4 + $0x60] ss:$8 sps:$4 sm:$0xff]  }
  0x7b   : > { %v2523_v48 = vld [vmem:[%s2387_s4 + $0xd0] ss:$8 sps:$4 sm:$0xff]   ;;  %v1995_v51 = vld [vmem:[#allocation5 + $0x40] sm:$0xff]   ;;  %v2003_v53 = vld [vmem:[#allocation5 + $0x48] sm:$0xff]  }
  0x7c   : > { %575 = vmatpush1.bf16.msra.mxu0 %v1935_v6  ;;  %1846 = vmatpush1.bf16.msra.mxu1 %v1935_v6  ;;  %v1996_v52 = vld [vmem:[#allocation5 + $0x100] sm:$0xff]   ;;  %v2004_v54 = vld [vmem:[#allocation5 + $0x108] sm:$0xff]   ;;  %v1997_v57 = vld [vmem:[%s2387_s4 + $0x74] ss:$8 sps:$4 sm:$0xff]  }
  0x7d   : > { %576 = vmatprep.subr.bf16.mxu0 %v2186_v0  ;;  %1835 = vmatprep.subr.bf16.mxu1 %v2186_v0  ;;  %v2543_v56 = vld [vmem:[%s2387_s4 + $0xe0] ss:$8 sps:$4 sm:$0xff]   ;;  %v2547_v58 = vld [vmem:[%s2387_s4 + $0xf4] ss:$8 sps:$4 sm:$0xff]   ;;  %v2001_v63 = vld [vmem:[%s2387_s4 + $0x70] ss:$8 sps:$4 sm:$0xff]  }
  0x7e   : > { %v2009_v59 = vld [vmem:[#allocation5 + $0x50] sm:$0xff]   ;;  %v2013_v61 = vld [vmem:[#allocation5 + $0x58] sm:$0xff]   ;;  %v2005_v2 = vld [vmem:[%s2387_s4 + $0x84] ss:$8 sps:$4 sm:$0xff]  }
  0x7f   : > { %v2012_v60 = vld [vmem:[#allocation5 + $0x110] sm:$0xff]   ;;  %v2014_v62 = vld [vmem:[#allocation5 + $0x118] sm:$0xff]   ;;  %v2563_v3 = vld [vmem:[%s2387_s4 + $0x104] ss:$8 sps:$4 sm:$0xff]  }
  0x80   : > { %577 = vmatpush1.bf16.msra.mxu0 %v1936_v8  ;;  %1847 = vmatpush1.bf16.msra.mxu1 %v1936_v8  ;;  %v2559_v1 = vld [vmem:[%s2387_s4 + $0xf0] ss:$8 sps:$4 sm:$0xff]   ;;  %v2010_v4 = vld [vmem:[%s2387_s4 + $0x80] ss:$8 sps:$4 sm:$0xff]  }
  0x81   : > { %578 = vmatprep.subr.bf16.mxu0 %v2186_v0  ;;  %1836 = vmatprep.subr.bf16.mxu1 %v2186_v0  ;;  %v2571_v6 = vld [vmem:[%s2387_s4 + $0x100] ss:$8 sps:$4 sm:$0xff]  }
  0x82   : > { %v2015_v8 = vld [vmem:[%s2387_s4] ss:$8 sps:$4 sm:$0xff]  }
  0x84   : > { %579 = vmatpush1.bf16.msra.mxu0 %v1937_v9  ;;  %1848 = vmatpush1.bf16.msra.mxu1 %v1937_v9 }
  0x85   : > { %580 = vmatprep.subr.bf16.mxu0 %v2186_v0  ;;  %1837 = vmatprep.subr.bf16.mxu1 %v2186_v0 }
  0x88   : > { %581 = vmatpush1.bf16.msra.mxu0 %v1938_v10  ;;  %1849 = vmatpush1.bf16.msra.mxu1 %v1938_v10 }
  0x89   : > { %582 = vmatprep.subr.bf16.mxu0 %v2186_v0  ;;  %1838 = vmatprep.subr.bf16.mxu1 %v2186_v0 }
  0x8c   : > { %583 = vmatpush1.bf16.msra.mxu0 %v1939_v11  ;;  %1850 = vmatpush1.bf16.msra.mxu1 %v1939_v11 }
  0x8d   : > { %584 = vmatprep.subr.bf16.mxu0 %v2186_v0  ;;  %1839 = vmatprep.subr.bf16.mxu1 %v2186_v0 }
  0x90   : > { %585 = vmatpush1.bf16.msra.mxu0 %v1940_v12  ;;  %1851 = vmatpush1.bf16.msra.mxu1 %v1940_v12 }
  0x91   : > { %586 = vmatprep.subr.bf16.mxu0 %v2186_v0  ;;  %1840 = vmatprep.subr.bf16.mxu1 %v2186_v0 }
  0x94   : > { %587 = vmatpush1.bf16.msra.mxu0 %v1941_v13  ;;  %1852 = vmatpush1.bf16.msra.mxu1 %v1941_v13 }
  0x95   : > { %588 = vmatprep.subr.bf16.mxu0 %v2186_v0  ;;  %1841 = vmatprep.subr.bf16.mxu1 %v2186_v0 }
  0x98   : > { %589 = vmatpush1.bf16.msra.mxu0 %v1942_v14  ;;  %1853 = vmatpush1.bf16.msra.mxu1 %v1942_v14 }
  0x99   : > { %811 = vmatprep.subr.bf16.mxu1 %v2186_v0  ;;  %1293 = vmatprep.subr.bf16.mxu0 %v2186_v0 }
  0x9b   : > { %599 = vmatmul.mubr.bf16.vlgmr.msra.gmra.mrb[0].mxu0 %v2432_v15  ;;  %663 = vmatmul.mubr.bf16.vlgmr.msra.gmra.mrb[0].mxu1 %v2435_v16 }
  0x9c   : > { %812 = vmatpush1.bf16.msra.mxu1 %v1949_v17  ;;  %1294 = vmatpush1.bf16.msra.mxu0 %v1950_v18 }
  0x9d   : > { %813 = vmatprep.subr.bf16.mxu1 %v2186_v0  ;;  %1718 = vmatprep.mubr.msk.bf16.mxu0 %vm517_vm0, %v2440_v19 }
  0x9e   : > { %1726 = vmatprep.mubr.msk.bf16.mxu1 %vm517_vm0, %v2443_v20  ;;  %1295 = vmatprep.subr.bf16.mxu0 %v2186_v0 }
  0xa0   : > { %814 = vmatpush1.bf16.msra.mxu1 %v1955_v21  ;;  %1296 = vmatpush1.bf16.msra.mxu0 %v1958_v22 }
  0xa1   : > { %815 = vmatprep.subr.bf16.mxu1 %v2186_v0  ;;  %1297 = vmatprep.subr.bf16.mxu0 %v2186_v0 }
  0xa3   : > { %607 = vmatmul.mubr.bf16.gmra.mrb[4].mxu0 %v2451_v23  ;;  %671 = vmatmul.mubr.bf16.gmra.mrb[4].mxu1 %v2456_v24 }
  0xa4   : > { %816 = vmatpush1.bf16.msra.mxu1 %v1959_v25  ;;  %1298 = vmatpush1.bf16.msra.mxu0 %v1960_v26 }
  0xa5   : > { %1719 = vmatprep.mubr.msk.bf16.mxu0 %vm517_vm0, %v2460_v27  ;;  %1727 = vmatprep.mubr.msk.bf16.mxu1 %vm517_vm0, %v2465_v28 }
  0xa6   : > { %817 = vmatprep.subr.bf16.mxu1 %v2186_v0  ;;  %1299 = vmatprep.subr.bf16.mxu0 %v2186_v0 }
  0xa8   : > { %818 = vmatpush1.bf16.msra.mxu1 %v1967_v29  ;;  %1300 = vmatpush1.bf16.msra.mxu0 %v1968_v30 }
  0xa9   : > { %819 = vmatprep.subr.bf16.mxu1 %v2186_v0  ;;  %1301 = vmatprep.subr.bf16.mxu0 %v2186_v0 }
  0xab   : > { %615 = vmatmul.mubr.bf16.gmra.mrb[8].mxu0 %v2476_v31  ;;  %679 = vmatmul.mubr.bf16.gmra.mrb[8].mxu1 %v2479_v32 }
  0xac   : > { %1720 = vmatprep.mubr.msk.bf16.mxu0 %vm517_vm0, %v2482_v33  ;;  %1728 = vmatprep.mubr.msk.bf16.mxu1 %vm517_vm0, %v2485_v34 }
  0xad   : > { %820 = vmatpush1.bf16.msra.mxu1 %v1973_v35  ;;  %1302 = vmatpush1.bf16.msra.mxu0 %v1976_v36 }
  0xae   : > { %821 = vmatprep.subr.bf16.mxu1 %v2186_v0  ;;  %1303 = vmatprep.subr.bf16.mxu0 %v2186_v0 }
  0xb1   : > { %822 = vmatpush1.bf16.msra.mxu1 %v1977_v37  ;;  %1304 = vmatpush1.bf16.msra.mxu0 %v1978_v38 }
  0xb2   : > { %823 = vmatprep.subr.bf16.mxu1 %v2186_v0  ;;  %1305 = vmatprep.subr.bf16.mxu0 %v2186_v0 }
  0xb3   : > { %623 = vmatmul.mubr.bf16.gmra.mrb[12].mxu0 %v2498_v39  ;;  %687 = vmatmul.mubr.bf16.gmra.mrb[12].mxu1 %v2501_v40 }
  0xb4   : > { %1721 = vmatprep.mubr.msk.bf16.mxu0 %vm517_vm0, %v2504_v41  ;;  %1729 = vmatprep.mubr.msk.bf16.mxu1 %vm517_vm0, %v2507_v42 }
  0xb5   : > { %824 = vmatpush1.bf16.msra.mxu1 %v1985_v43  ;;  %1306 = vmatpush1.bf16.msra.mxu0 %v1986_v44 }
  0xb6   : > { %825 = vmatprep.subr.bf16.mxu1 %v2186_v0  ;;  %1307 = vmatprep.subr.bf16.mxu0 %v2186_v0 }
  0xb9   : > { %826 = vmatpush1.bf16.msra.mxu1 %v1991_v45  ;;  %1308 = vmatpush1.bf16.msra.mxu0 %v1994_v46 }
  0xba   : > { %827 = vmatprep.subr.bf16.mxu1 %v2186_v0  ;;  %1309 = vmatprep.subr.bf16.mxu0 %v2186_v0 }
  0xbb   : > { %631 = vmatmul.mubr.bf16.gmra.mrb[16].mxu0 %v2520_v47  ;;  %695 = vmatmul.mubr.bf16.gmra.mrb[16].mxu1 %v2523_v48 }
  0xbc   : > { %1722 = vmatprep.mubr.msk.bf16.mxu0 %vm517_vm0, %v2526_v49  ;;  %1730 = vmatprep.mubr.msk.bf16.mxu1 %vm517_vm0, %v2529_v50 }
  0xbd   : > { %828 = vmatpush1.bf16.msra.mxu1 %v1995_v51  ;;  %1310 = vmatpush1.bf16.msra.mxu0 %v1996_v52 }
  0xbe   : > { %829 = vmatprep.subr.bf16.mxu1 %v2186_v0  ;;  %1311 = vmatprep.subr.bf16.mxu0 %v2186_v0 }
  0xc1   : > { %830 = vmatpush1.bf16.msra.mxu1 %v2003_v53  ;;  %1312 = vmatpush1.bf16.msra.mxu0 %v2004_v54 }
  0xc2   : > { %831 = vmatprep.subr.bf16.mxu1 %v2186_v0  ;;  %1313 = vmatprep.subr.bf16.mxu0 %v2186_v0 }
  0xc3   : > { %639 = vmatmul.mubr.bf16.gmra.mrb[20].mxu0 %v1992_v55  ;;  %703 = vmatmul.mubr.bf16.gmra.mrb[20].mxu1 %v2543_v56 }
  0xc4   : > { %1723 = vmatprep.mubr.msk.bf16.mxu0 %vm517_vm0, %v1997_v57  ;;  %1731 = vmatprep.mubr.msk.bf16.mxu1 %vm517_vm0, %v2547_v58 }
  0xc5   : > { %832 = vmatpush1.bf16.msra.mxu1 %v2009_v59  ;;  %1314 = vmatpush1.bf16.msra.mxu0 %v2012_v60 }
  0xc6   : > { %833 = vmatprep.subr.bf16.mxu1 %v2186_v0  ;;  %1315 = vmatprep.subr.bf16.mxu0 %v2186_v0  ;;  %v2017_v0 = vld [vmem:[%s2387_s4 + $0x4] ss:$8 sps:$4 sm:$0xff]  }
  0xc9   : > { %834 = vmatpush1.bf16.msra.mxu1 %v2013_v61  ;;  %1316 = vmatpush1.bf16.msra.mxu0 %v2014_v62 }
  0xcb   : > { %647 = vmatmul.mubr.bf16.gmra.mrb[24].mxu0 %v2001_v63  ;;  %711 = vmatmul.mubr.bf16.gmra.mrb[24].mxu1 %v2559_v1 }
  0xcc   : > { %1724 = vmatprep.mubr.msk.bf16.mxu0 %vm517_vm0, %v2005_v2  ;;  %1732 = vmatprep.mubr.msk.bf16.mxu1 %vm517_vm0, %v2563_v3 }
  0xd3   : > { %655 = vmatmul.mubr.bf16.gmra.mrb[28].mxu0 %v2010_v4  ;;  %719 = vmatmul.mubr.bf16.gmra.mrb[28].mxu1 %v2571_v6 }
  0xd4   : > { %1747 = vmatprep.mubr.msk.bf16.mxu1 %vm517_vm0, %v2017_v0  ;;  %1807 = vmatprep.mubr.msk.bf16.mxu0 %vm517_vm0, %v2440_v19 }
  0xdb   : > { %844 = vmatmul.mubr.bf16.vlgmr.msra.gmra.mrb[32].mxu1 %v2015_v8  ;;  %1326 = vmatmul.mubr.bf16.vlgmr.msra.gmra.mrb[32].mxu0 %v2451_v23 }
  0xdc   : > { %1748 = vmatprep.mubr.msk.bf16.mxu1 %vm517_vm0, %v2406_v5  ;;  %1808 = vmatprep.mubr.msk.bf16.mxu0 %vm517_vm0, %v2460_v27  ;;  %v2018_v5 = vld [vmem:[%s2387_s4 + $0x114] ss:$8 sps:$4 sm:$0xff]  }
  0xe3   : > { %852 = vmatmul.mubr.bf16.gmra.mrb[36].mxu1 %v2432_v15  ;;  %1334 = vmatmul.mubr.bf16.gmra.mrb[36].mxu0 %v2476_v31 }
  0xe4   : > { %1749 = vmatprep.mubr.msk.bf16.mxu1 %vm517_vm0, %v2440_v19  ;;  %1809 = vmatprep.mubr.msk.bf16.mxu0 %vm517_vm0, %v2482_v33 }
  0xeb   : > { %860 = vmatmul.mubr.bf16.gmra.mrb[40].mxu1 %v2451_v23  ;;  %1342 = vmatmul.mubr.bf16.gmra.mrb[40].mxu0 %v2498_v39 }
  0xec   : > { %1750 = vmatprep.mubr.msk.bf16.mxu1 %vm517_vm0, %v2460_v27  ;;  %1810 = vmatprep.mubr.msk.bf16.mxu0 %vm517_vm0, %v2504_v41 }
  0xf3   : > { %868 = vmatmul.mubr.bf16.gmra.mrb[44].mxu1 %v2476_v31  ;;  %1350 = vmatmul.mubr.bf16.gmra.mrb[44].mxu0 %v2520_v47 }
  0xf4   : > { %1751 = vmatprep.mubr.msk.bf16.mxu1 %vm517_vm0, %v2482_v33  ;;  %1811 = vmatprep.mubr.msk.bf16.mxu0 %vm517_vm0, %v2526_v49 }
  0xfb   : > { %876 = vmatmul.mubr.bf16.gmra.mrb[48].mxu1 %v2498_v39  ;;  %1358 = vmatmul.mubr.bf16.gmra.mrb[48].mxu0 %v1992_v55 }
  0xfc   : > { %1752 = vmatprep.mubr.msk.bf16.mxu1 %vm517_vm0, %v2504_v41  ;;  %1812 = vmatprep.mubr.msk.bf16.mxu0 %vm517_vm0, %v1997_v57 }
 0x103   : > { %884 = vmatmul.mubr.bf16.gmra.mrb[52].mxu1 %v2520_v47  ;;  %1366 = vmatmul.mubr.bf16.gmra.mrb[52].mxu0 %v2001_v63 }
 0x104   : > { %1753 = vmatprep.mubr.msk.bf16.mxu1 %vm517_vm0, %v2526_v49  ;;  %1813 = vmatprep.mubr.msk.bf16.mxu0 %vm517_vm0, %v2005_v2 }
 0x10b   : > { %892 = vmatmul.mubr.bf16.gmra.mrb[56].mxu1 %v1992_v55  ;;  %1374 = vmatmul.mubr.bf16.gmra.mrb[56].mxu0 %v2010_v4 }
 0x10c   : > { %1754 = vmatprep.mubr.msk.bf16.mxu1 %vm517_vm0, %v1997_v57  ;;  %1814 = vmatprep.mubr.msk.bf16.mxu0 %vm517_vm0, %v2409_v7 }
 0x113   : > { %900 = vmatmul.mubr.bf16.gmra.mrb[60].mxu1 %v2001_v63  ;;  %1382 = vmatmul.mubr.bf16.gmra.mrb[60].mxu0 %v2435_v16 }
 0x114   : > { %1755 = vmatprep.mubr.msk.bf16.mxu1 %vm517_vm0, %v2005_v2  ;;  %1815 = vmatprep.mubr.msk.bf16.mxu0 %vm517_vm0, %v2443_v20 }
 0x11b   : > { %908 = vmatmul.mubr.bf16.gmra.mrb[64].mxu1 %v2010_v4  ;;  %1390 = vmatmul.mubr.bf16.gmra.mrb[64].mxu0 %v2456_v24 }
 0x11c   : > { %1756 = vmatprep.mubr.msk.bf16.mxu1 %vm517_vm0, %v2409_v7  ;;  %1816 = vmatprep.mubr.msk.bf16.mxu0 %vm517_vm0, %v2465_v28  ;;  %v2020_v7 = vld [vmem:[%s2387_s4 + $0x110] ss:$8 sps:$4 sm:$0xff]  }
 0x123   : > { %916 = vmatmul.mubr.bf16.gmra.mrb[68].mxu1 %v2435_v16  ;;  %1398 = vmatmul.mubr.bf16.gmra.mrb[68].mxu0 %v2479_v32 }
 0x124   : > { %1757 = vmatprep.mubr.msk.bf16.mxu1 %vm517_vm0, %v2443_v20  ;;  %1817 = vmatprep.mubr.msk.bf16.mxu0 %vm517_vm0, %v2485_v34 }
 0x12b   : > { %924 = vmatmul.mubr.bf16.gmra.mrb[72].mxu1 %v2456_v24  ;;  %1406 = vmatmul.mubr.bf16.gmra.mrb[72].mxu0 %v2501_v40 }
 0x12c   : > { %1758 = vmatprep.mubr.msk.bf16.mxu1 %vm517_vm0, %v2465_v28  ;;  %1818 = vmatprep.mubr.msk.bf16.mxu0 %vm517_vm0, %v2507_v42 }
 0x133   : > { %932 = vmatmul.mubr.bf16.gmra.mrb[76].mxu1 %v2479_v32  ;;  %1414 = vmatmul.mubr.bf16.gmra.mrb[76].mxu0 %v2523_v48 }
 0x134   : > { %1759 = vmatprep.mubr.msk.bf16.mxu1 %vm517_vm0, %v2485_v34  ;;  %1819 = vmatprep.mubr.msk.bf16.mxu0 %vm517_vm0, %v2529_v50 }
 0x13b   : > { %940 = vmatmul.mubr.bf16.gmra.mrb[80].mxu1 %v2501_v40  ;;  %1422 = vmatmul.mubr.bf16.gmra.mrb[80].mxu0 %v2543_v56 }
 0x13c   : > { %1760 = vmatprep.mubr.msk.bf16.mxu1 %vm517_vm0, %v2507_v42  ;;  %1820 = vmatprep.mubr.msk.bf16.mxu0 %vm517_vm0, %v2547_v58 }
 0x143   : > { %948 = vmatmul.mubr.bf16.gmra.mrb[84].mxu1 %v2523_v48  ;;  %1430 = vmatmul.mubr.bf16.gmra.mrb[84].mxu0 %v2559_v1 }
 0x144   : > { %1761 = vmatprep.mubr.msk.bf16.mxu1 %vm517_vm0, %v2529_v50  ;;  %1821 = vmatprep.mubr.msk.bf16.mxu0 %vm517_vm0, %v2563_v3 }
 0x14b   : > { %956 = vmatmul.mubr.bf16.gmra.mrb[88].mxu1 %v2543_v56  ;;  %1438 = vmatmul.mubr.bf16.gmra.mrb[88].mxu0 %v2571_v6 }
 0x14c   : > { %1762 = vmatprep.mubr.msk.bf16.mxu1 %vm517_vm0, %v2547_v58  ;;  %1822 = vmatprep.mubr.msk.bf16.mxu0 %vm517_vm0, %v2018_v5 }
 0x153   : > { %964 = vmatmul.mubr.bf16.gmra.mrb[92].mxu1 %v2559_v1  ;;  %1446 = vmatmul.mubr.bf16.gmra.mrb[92].mxu0 %v2020_v7 }
 0x16e   : > { %v2660_v9 = vpop.f32.mrb[0].mxu0  ;;  %v2662_v10 = vpop.f32.mrb[0].mxu1 }
 0x16f   : > { %v602_v11 = vpop.f32.mrb[1].mxu0  ;;  %v666_v12 = vpop.f32.mrb[1].mxu1 }
 0x170   : > { %v2664_v13 = vpop.f32.mrb[2].mxu0  ;;  %v2666_v14 = vpop.f32.mrb[2].mxu1 }
 0x171   : > { %v605_v15 = vpop.f32.mrb[3].mxu0  ;;  %v669_v16 = vpop.f32.mrb[3].mxu1 }
 0x176   : > { %v2668_v17 = vpop.f32.mrb[4].mxu0  ;;  %v2670_v18 = vpop.f32.mrb[4].mxu1 }
 0x177   : > { %v610_v19 = vpop.f32.mrb[5].mxu0  ;;  %v674_v20 = vpop.f32.mrb[5].mxu1 }
 0x178   : > { %v2672_v21 = vpop.f32.mrb[6].mxu0  ;;  %v2674_v22 = vpop.f32.mrb[6].mxu1  ;;  %v2726_v20 = vld [vmem:[#allocation7] ss:$0 sm:$0xff] }
 0x179   : > { %v613_v23 = vpop.f32.mrb[7].mxu0  ;;  %v677_v24 = vpop.f32.mrb[7].mxu1 }
 0x17e   : > { %v2676_v25 = vpop.f32.mrb[8].mxu0  ;;  %v2678_v26 = vpop.f32.mrb[8].mxu1 }
 0x17f   : > { %v618_v27 = vpop.f32.mrb[9].mxu0  ;;  %v682_v28 = vpop.f32.mrb[9].mxu1 }
 0x180   : > { %v2680_v29 = vpop.f32.mrb[10].mxu0  ;;  %v2682_v30 = vpop.f32.mrb[10].mxu1 }
 0x181   : > { %v621_v31 = vpop.f32.mrb[11].mxu0  ;;  %v685_v32 = vpop.f32.mrb[11].mxu1 }
 0x186   : > { %v2684_v33 = vpop.f32.mrb[12].mxu0  ;;  %v2686_v34 = vpop.f32.mrb[12].mxu1 }
 0x187   : > { %v626_v35 = vpop.f32.mrb[13].mxu0  ;;  %v690_v36 = vpop.f32.mrb[13].mxu1 }
 0x188   : > { %v2688_v37 = vpop.f32.mrb[14].mxu0  ;;  %v2690_v38 = vpop.f32.mrb[14].mxu1 }
 0x189   : > { %v629_v39 = vpop.f32.mrb[15].mxu0  ;;  %v693_v40 = vpop.f32.mrb[15].mxu1 }
 0x18e   : > { %v2692_v41 = vpop.f32.mrb[16].mxu0  ;;  %v2694_v42 = vpop.f32.mrb[16].mxu1 }
 0x18f   : > { %v634_v43 = vpop.f32.mrb[17].mxu0  ;;  %v698_v44 = vpop.f32.mrb[17].mxu1 }
 0x190   : > { %v2696_v45 = vpop.f32.mrb[18].mxu0  ;;  %v2698_v46 = vpop.f32.mrb[18].mxu1 }
 0x191   : > { %v637_v47 = vpop.f32.mrb[19].mxu0  ;;  %v701_v48 = vpop.f32.mrb[19].mxu1 }
 0x196   : > { %v2700_v49 = vpop.f32.mrb[20].mxu0  ;;  %v2702_v50 = vpop.f32.mrb[20].mxu1 }
 0x197   : > { %v642_v51 = vpop.f32.mrb[21].mxu0  ;;  %v706_v52 = vpop.f32.mrb[21].mxu1 }
 0x198   : > { %v2704_v53 = vpop.f32.mrb[22].mxu0  ;;  %v2706_v54 = vpop.f32.mrb[22].mxu1 }
 0x199   : > { %v645_v55 = vpop.f32.mrb[23].mxu0  ;;  %v709_v56 = vpop.f32.mrb[23].mxu1 }
 0x19e   : > { %v2708_v57 = vpop.f32.mrb[24].mxu0  ;;  %v2710_v58 = vpop.f32.mrb[24].mxu1 }
 0x19f   : > { %v650_v59 = vpop.f32.mrb[25].mxu0  ;;  %v714_v60 = vpop.f32.mrb[25].mxu1 }
 0x1a0   : > { %v2712_v61 = vpop.f32.mrb[26].mxu0  ;;  %v2714_v62 = vpop.f32.mrb[26].mxu1 }
 0x1a1   : > { %v653_v63 = vpop.f32.mrb[27].mxu0  ;;  %v717_v1 = vpop.f32.mrb[27].mxu1 }
 0x1a6   : > { %v2716_v2 = vpop.f32.mrb[28].mxu0  ;;  %v2718_v3 = vpop.f32.mrb[28].mxu1 }
 0x1a7   : > { %v658_v4 = vpop.f32.mrb[29].mxu0  ;;  %v722_v6 = vpop.f32.mrb[29].mxu1 }
 0x1a8   : > { %v2720_v0 = vpop.f32.mrb[30].mxu0  ;;  %v2722_v8 = vpop.f32.mrb[30].mxu1 }
 0x1a9   : > { %v661_v5 = vpop.f32.mrb[31].mxu0  ;;  %v725_v7 = vpop.f32.mrb[31].mxu1 }
 0x1ae   : > { %v845_v11 = vpop.f32.mrb[32].mxu1  ;;  %v1327_v12 = vpop.f32.mrb[32].mxu0 }
 0x1af   : > { %v846_v15 = vadd.f32 %v845_v11, %v2660_v9  ;;  %v847_v16 = vpop.f32.mrb[33].mxu1  ;;  %v1329_v19 = vpop.f32.mrb[33].mxu0 }
 0x1b0   : > { %v848_v23 = vpop.f32.mrb[34].mxu1  ;;  %v1330_v24 = vpop.f32.mrb[34].mxu0 }
 0x1b1   : > { %v1454_v27 = vadd.f32 %v1327_v12, %v846_v15  ;;  %v849_v28 = vadd.f32 %v848_v23, %v2664_v13  ;;  %v850_v31 = vpop.f32.mrb[35].mxu1  ;;  %v1332_v32 = vpop.f32.mrb[35].mxu0 }
 0x1b3   : > { %v1493_v35 = vadd.f32 %v2726_v20, %v1454_v27  ;;  %v1455_v36 = vadd.f32 %v1330_v24, %v849_v28 }
 0x1b5   : > { %1525 = vst [vmem:[%s2730_s20] sm:$0xff] %v1493_v35  ;;  %v1494_v9 = vadd.f32 %v2726_v20, %v1455_v36 }
 0x1b6   : > { %v853_v39 = vpop.f32.mrb[36].mxu1  ;;  %v1335_v40 = vpop.f32.mrb[36].mxu0 }
 0x1b7   : > { %1526 = vst [vmem:[%s2730_s20 + $0x8] sm:$0xff] %v1494_v9  ;;  %v854_v43 = vadd.f32 %v853_v39, %v2668_v17  ;;  %v855_v13 = vpop.f32.mrb[37].mxu1  ;;  %v1337_v44 = vpop.f32.mrb[37].mxu0 }
 0x1b8   : > { %v856_v47 = vpop.f32.mrb[38].mxu1  ;;  %v1338_v48 = vpop.f32.mrb[38].mxu0 }
 0x1b9   : > { %v1456_v51 = vadd.f32 %v1335_v40, %v854_v43  ;;  %v857_v52 = vadd.f32 %v856_v47, %v2672_v21  ;;  %v858_v55 = vpop.f32.mrb[39].mxu1  ;;  %v1340_v56 = vpop.f32.mrb[39].mxu0 }
 0x1bb   : > { %v1495_v59 = vadd.f32 %v2726_v20, %v1456_v51  ;;  %v1457_v60 = vadd.f32 %v1338_v48, %v857_v52 }
 0x1bd   : > { %1527 = vst [vmem:[%s2730_s20 + $0x10] sm:$0xff] %v1495_v59  ;;  %v1496_v63 = vadd.f32 %v2726_v20, %v1457_v60 }
 0x1be   : > { %v861_v1 = vpop.f32.mrb[40].mxu1  ;;  %v1343_v4 = vpop.f32.mrb[40].mxu0 }
 0x1bf   : > { %1528 = vst [vmem:[%s2730_s20 + $0x18] sm:$0xff] %v1496_v63  ;;  %v862_v17 = vadd.f32 %v861_v1, %v2676_v25  ;;  %v863_v6 = vpop.f32.mrb[41].mxu1  ;;  %v1345_v5 = vpop.f32.mrb[41].mxu0 }
 0x1c0   : > { %v864_v7 = vpop.f32.mrb[42].mxu1  ;;  %v1346_v11 = vpop.f32.mrb[42].mxu0 }
 0x1c1   : > { %v1458_v21 = vadd.f32 %v1343_v4, %v862_v17  ;;  %v865_v12 = vadd.f32 %v864_v7, %v2680_v29  ;;  %v866_v15 = vpop.f32.mrb[43].mxu1  ;;  %v1348_v16 = vpop.f32.mrb[43].mxu0 }
 0x1c3   : > { %v1497_v19 = vadd.f32 %v2726_v20, %v1458_v21  ;;  %v1459_v23 = vadd.f32 %v1346_v11, %v865_v12 }
 0x1c5   : > { %1529 = vst [vmem:[%s2730_s20 + $0x20] sm:$0xff] %v1497_v19  ;;  %v1498_v24 = vadd.f32 %v2726_v20, %v1459_v23 }
 0x1c6   : > { %v869_v27 = vpop.f32.mrb[44].mxu1  ;;  %v1351_v28 = vpop.f32.mrb[44].mxu0 }
 0x1c7   : > { %1530 = vst [vmem:[%s2730_s20 + $0x28] sm:$0xff] %v1498_v24  ;;  %v870_v25 = vadd.f32 %v869_v27, %v2684_v33  ;;  %v871_v31 = vpop.f32.mrb[45].mxu1  ;;  %v1353_v32 = vpop.f32.mrb[45].mxu0 }
 0x1c8   : > { %v872_v35 = vpop.f32.mrb[46].mxu1  ;;  %v1354_v36 = vpop.f32.mrb[46].mxu0 }
 0x1c9   : > { %v1460_v29 = vadd.f32 %v1351_v28, %v870_v25  ;;  %v873_v9 = vadd.f32 %v872_v35, %v2688_v37  ;;  %v874_v39 = vpop.f32.mrb[47].mxu1  ;;  %v1356_v40 = vpop.f32.mrb[47].mxu0 }
 0x1cb   : > { %v1499_v43 = vadd.f32 %v2726_v20, %v1460_v29  ;;  %v1461_v13 = vadd.f32 %v1354_v36, %v873_v9 }
 0x1cd   : > { %1531 = vst [vmem:[%s2730_s20 + $0x30] sm:$0xff] %v1499_v43  ;;  %v1500_v44 = vadd.f32 %v2726_v20, %v1461_v13 }
 0x1ce   : > { %v877_v47 = vpop.f32.mrb[48].mxu1  ;;  %v1359_v48 = vpop.f32.mrb[48].mxu0 }
 0x1cf   : > { %1532 = vst [vmem:[%s2730_s20 + $0x38] sm:$0xff] %v1500_v44  ;;  %v878_v33 = vadd.f32 %v877_v47, %v2692_v41  ;;  %v879_v51 = vpop.f32.mrb[49].mxu1  ;;  %v1361_v52 = vpop.f32.mrb[49].mxu0 }
 0x1d0   : > { %v880_v55 = vpop.f32.mrb[50].mxu1  ;;  %v1362_v56 = vpop.f32.mrb[50].mxu0 }
 0x1d1   : > { %v1462_v37 = vadd.f32 %v1359_v48, %v878_v33  ;;  %v881_v59 = vadd.f32 %v880_v55, %v2696_v45  ;;  %v882_v60 = vpop.f32.mrb[51].mxu1  ;;  %v1364_v63 = vpop.f32.mrb[51].mxu0 }
 0x1d3   : > { %v1501_v1 = vadd.f32 %v2726_v20, %v1462_v37  ;;  %v1463_v4 = vadd.f32 %v1362_v56, %v881_v59 }
 0x1d5   : > { %1533 = vst [vmem:[%s2730_s20 + $0x40] sm:$0xff] %v1501_v1  ;;  %v1502_v17 = vadd.f32 %v2726_v20, %v1463_v4 }
 0x1d6   : > { %v885_v6 = vpop.f32.mrb[52].mxu1  ;;  %v1367_v5 = vpop.f32.mrb[52].mxu0 }
 0x1d7   : > { %1534 = vst [vmem:[%s2730_s20 + $0x48] sm:$0xff] %v1502_v17  ;;  %v886_v41 = vadd.f32 %v885_v6, %v2700_v49  ;;  %v887_v7 = vpop.f32.mrb[53].mxu1  ;;  %v1369_v11 = vpop.f32.mrb[53].mxu0 }
 0x1d8   : > { %v888_v21 = vpop.f32.mrb[54].mxu1  ;;  %v1370_v12 = vpop.f32.mrb[54].mxu0 }
 0x1d9   : > { %v1464_v45 = vadd.f32 %v1367_v5, %v886_v41  ;;  %v889_v15 = vadd.f32 %v888_v21, %v2704_v53  ;;  %v890_v16 = vpop.f32.mrb[55].mxu1  ;;  %v1372_v19 = vpop.f32.mrb[55].mxu0 }
 0x1db   : > { %v1503_v23 = vadd.f32 %v2726_v20, %v1464_v45  ;;  %v1465_v24 = vadd.f32 %v1370_v12, %v889_v15 }
 0x1dd   : > { %1535 = vst [vmem:[%s2730_s20 + $0x50] sm:$0xff] %v1503_v23  ;;  %v1504_v27 = vadd.f32 %v2726_v20, %v1465_v24 }
 0x1de   : > { %v893_v28 = vpop.f32.mrb[56].mxu1  ;;  %v1375_v25 = vpop.f32.mrb[56].mxu0 }
 0x1df   : > { %1536 = vst [vmem:[%s2730_s20 + $0x58] sm:$0xff] %v1504_v27  ;;  %v894_v49 = vadd.f32 %v893_v28, %v2708_v57  ;;  %v895_v31 = vpop.f32.mrb[57].mxu1  ;;  %v1377_v32 = vpop.f32.mrb[57].mxu0 }
 0x1e0   : > { %v896_v35 = vpop.f32.mrb[58].mxu1  ;;  %v1378_v36 = vpop.f32.mrb[58].mxu0 }
 0x1e1   : > { %v1466_v53 = vadd.f32 %v1375_v25, %v894_v49  ;;  %v897_v29 = vadd.f32 %v896_v35, %v2712_v61  ;;  %v898_v9 = vpop.f32.mrb[59].mxu1  ;;  %v1380_v39 = vpop.f32.mrb[59].mxu0 }
 0x1e3   : > { %v1505_v40 = vadd.f32 %v2726_v20, %v1466_v53  ;;  %v1467_v43 = vadd.f32 %v1378_v36, %v897_v29 }
 0x1e5   : > { %1537 = vst [vmem:[%s2730_s20 + $0x60] sm:$0xff] %v1505_v40  ;;  %v1506_v13 = vadd.f32 %v2726_v20, %v1467_v43 }
 0x1e6   : > { %v901_v44 = vpop.f32.mrb[60].mxu1  ;;  %v1383_v47 = vpop.f32.mrb[60].mxu0 }
 0x1e7   : > { %1538 = vst [vmem:[%s2730_s20 + $0x68] sm:$0xff] %v1506_v13  ;;  %v902_v57 = vadd.f32 %v901_v44, %v2716_v2  ;;  %v903_v48 = vpop.f32.mrb[61].mxu1  ;;  %v1385_v33 = vpop.f32.mrb[61].mxu0 }
 0x1e8   : > { %v904_v51 = vpop.f32.mrb[62].mxu1  ;;  %v1386_v52 = vpop.f32.mrb[62].mxu0 }
 0x1e9   : > { %v1468_v61 = vadd.f32 %v1383_v47, %v902_v57  ;;  %v905_v55 = vadd.f32 %v904_v51, %v2720_v0  ;;  %v906_v56 = vpop.f32.mrb[63].mxu1  ;;  %v1388_v37 = vpop.f32.mrb[63].mxu0 }
 0x1eb   : > { %v1507_v59 = vadd.f32 %v2726_v20, %v1468_v61  ;;  %v1469_v60 = vadd.f32 %v1386_v52, %v905_v55 }
 0x1ed   : > { %1539 = vst [vmem:[%s2730_s20 + $0x70] sm:$0xff] %v1507_v59  ;;  %v1508_v63 = vadd.f32 %v2726_v20, %v1469_v60 }
 0x1ee   : > { %v909_v1 = vpop.f32.mrb[64].mxu1  ;;  %v1391_v4 = vpop.f32.mrb[64].mxu0 }
 0x1ef   : > { %1540 = vst [vmem:[%s2730_s20 + $0x78] sm:$0xff] %v1508_v63  ;;  %v910_v2 = vadd.f32 %v909_v1, %v2662_v10  ;;  %v911_v17 = vpop.f32.mrb[65].mxu1  ;;  %v1393_v6 = vpop.f32.mrb[65].mxu0 }
 0x1f0   : > { %v912_v5 = vpop.f32.mrb[66].mxu1  ;;  %v1394_v41 = vpop.f32.mrb[66].mxu0 }
 0x1f1   : > { %v1470_v0 = vadd.f32 %v1391_v4, %v910_v2  ;;  %v913_v7 = vadd.f32 %v912_v5, %v2666_v14  ;;  %v914_v11 = vpop.f32.mrb[67].mxu1  ;;  %v1396_v21 = vpop.f32.mrb[67].mxu0 }
 0x1f3   : > { %v1509_v12 = vadd.f32 %v2726_v20, %v1470_v0  ;;  %v1471_v45 = vadd.f32 %v1394_v41, %v913_v7 }
 0x1f5   : > { %1541 = vst [vmem:[%s2730_s20 + $0x80] sm:$0xff] %v1509_v12  ;;  %v1510_v15 = vadd.f32 %v2726_v20, %v1471_v45 }
 0x1f6   : > { %v917_v16 = vpop.f32.mrb[68].mxu1  ;;  %v1399_v19 = vpop.f32.mrb[68].mxu0 }
 0x1f7   : > { %1542 = vst [vmem:[%s2730_s20 + $0x88] sm:$0xff] %v1510_v15  ;;  %v918_v10 = vadd.f32 %v917_v16, %v2670_v18  ;;  %v919_v23 = vpop.f32.mrb[69].mxu1  ;;  %v1401_v24 = vpop.f32.mrb[69].mxu0 }
 0x1f8   : > { %v920_v27 = vpop.f32.mrb[70].mxu1  ;;  %v1402_v28 = vpop.f32.mrb[70].mxu0 }
 0x1f9   : > { %v1472_v14 = vadd.f32 %v1399_v19, %v918_v10  ;;  %v921_v25 = vadd.f32 %v920_v27, %v2674_v22  ;;  %v922_v49 = vpop.f32.mrb[71].mxu1  ;;  %v1404_v31 = vpop.f32.mrb[71].mxu0 }
 0x1fb   : > { %v1511_v32 = vadd.f32 %v2726_v20, %v1472_v14  ;;  %v1473_v35 = vadd.f32 %v1402_v28, %v921_v25 }
 0x1fd   : > { %1543 = vst [vmem:[%s2730_s20 + $0x90] sm:$0xff] %v1511_v32  ;;  %v1512_v36 = vadd.f32 %v2726_v20, %v1473_v35 }
 0x1fe   : > { %v925_v53 = vpop.f32.mrb[72].mxu1  ;;  %v1407_v29 = vpop.f32.mrb[72].mxu0 }
 0x1ff   : > { %1544 = vst [vmem:[%s2730_s20 + $0x98] sm:$0xff] %v1512_v36  ;;  %v926_v18 = vadd.f32 %v925_v53, %v2678_v26  ;;  %v927_v9 = vpop.f32.mrb[73].mxu1  ;;  %v1409_v39 = vpop.f32.mrb[73].mxu0 }
 0x200   : > { %v928_v40 = vpop.f32.mrb[74].mxu1  ;;  %v1410_v43 = vpop.f32.mrb[74].mxu0 }
 0x201   : > { %v1474_v22 = vadd.f32 %v1407_v29, %v926_v18  ;;  %v929_v13 = vadd.f32 %v928_v40, %v2682_v30  ;;  %v930_v44 = vpop.f32.mrb[75].mxu1  ;;  %v1412_v47 = vpop.f32.mrb[75].mxu0 }
 0x203   : > { %v1513_v57 = vadd.f32 %v2726_v20, %v1474_v22  ;;  %v1475_v48 = vadd.f32 %v1410_v43, %v929_v13 }
 0x205   : > { %1545 = vst [vmem:[%s2730_s20 + $0xa0] sm:$0xff] %v1513_v57  ;;  %v1514_v33 = vadd.f32 %v2726_v20, %v1475_v48 }
 0x206   : > { %v933_v51 = vpop.f32.mrb[76].mxu1  ;;  %v1415_v52 = vpop.f32.mrb[76].mxu0 }
 0x207   : > { %1546 = vst [vmem:[%s2730_s20 + $0xa8] sm:$0xff] %v1514_v33  ;;  %v934_v26 = vadd.f32 %v933_v51, %v2686_v34  ;;  %v935_v61 = vpop.f32.mrb[77].mxu1  ;;  %v1417_v55 = vpop.f32.mrb[77].mxu0 }
 0x208   : > { %v936_v56 = vpop.f32.mrb[78].mxu1  ;;  %v1418_v37 = vpop.f32.mrb[78].mxu0 }
 0x209   : > { %v1476_v30 = vadd.f32 %v1415_v52, %v934_v26  ;;  %v937_v59 = vadd.f32 %v936_v56, %v2690_v38  ;;  %v938_v60 = vpop.f32.mrb[79].mxu1  ;;  %v1420_v63 = vpop.f32.mrb[79].mxu0 }
 0x20b   : > { %v1515_v1 = vadd.f32 %v2726_v20, %v1476_v30  ;;  %v1477_v4 = vadd.f32 %v1418_v37, %v937_v59 }
 0x20d   : > { %1547 = vst [vmem:[%s2730_s20 + $0xb0] sm:$0xff] %v1515_v1  ;;  %v1516_v2 = vadd.f32 %v2726_v20, %v1477_v4 }
 0x20e   : > { %v941_v17 = vpop.f32.mrb[80].mxu1  ;;  %v1423_v6 = vpop.f32.mrb[80].mxu0 }
 0x20f   : > { %1548 = vst [vmem:[%s2730_s20 + $0xb8] sm:$0xff] %v1516_v2  ;;  %v942_v34 = vadd.f32 %v941_v17, %v2694_v42  ;;  %v943_v5 = vpop.f32.mrb[81].mxu1  ;;  %v1425_v41 = vpop.f32.mrb[81].mxu0 }
 0x210   : > { %v944_v0 = vpop.f32.mrb[82].mxu1  ;;  %v1426_v7 = vpop.f32.mrb[82].mxu0 }
 0x211   : > { %v1478_v38 = vadd.f32 %v1423_v6, %v942_v34  ;;  %v945_v11 = vadd.f32 %v944_v0, %v2698_v46  ;;  %v946_v21 = vpop.f32.mrb[83].mxu1  ;;  %v1428_v12 = vpop.f32.mrb[83].mxu0 }
 0x213   : > { %v1517_v45 = vadd.f32 %v2726_v20, %v1478_v38  ;;  %v1479_v15 = vadd.f32 %v1426_v7, %v945_v11 }
 0x215   : > { %1549 = vst [vmem:[%s2730_s20 + $0xc0] sm:$0xff] %v1517_v45  ;;  %v1518_v16 = vadd.f32 %v2726_v20, %v1479_v15 }
 0x216   : > { %v949_v19 = vpop.f32.mrb[84].mxu1  ;;  %v1431_v10 = vpop.f32.mrb[84].mxu0 }
 0x217   : > { %1550 = vst [vmem:[%s2730_s20 + $0xc8] sm:$0xff] %v1518_v16  ;;  %v950_v42 = vadd.f32 %v949_v19, %v2702_v50  ;;  %v951_v23 = vpop.f32.mrb[85].mxu1  ;;  %v1433_v24 = vpop.f32.mrb[85].mxu0 }
 0x218   : > { %v952_v27 = vpop.f32.mrb[86].mxu1  ;;  %v1434_v28 = vpop.f32.mrb[86].mxu0 }
 0x219   : > { %v1480_v46 = vadd.f32 %v1431_v10, %v950_v42  ;;  %v953_v14 = vadd.f32 %v952_v27, %v2706_v54  ;;  %v954_v25 = vpop.f32.mrb[87].mxu1  ;;  %v1436_v49 = vpop.f32.mrb[87].mxu0 }
 0x21b   : > { %v1519_v31 = vadd.f32 %v2726_v20, %v1480_v46  ;;  %v1481_v32 = vadd.f32 %v1434_v28, %v953_v14 }
 0x21d   : > { %1551 = vst [vmem:[%s2730_s20 + $0xd0] sm:$0xff] %v1519_v31  ;;  %v1520_v35 = vadd.f32 %v2726_v20, %v1481_v32 }
 0x21e   : > { %v957_v36 = vpop.f32.mrb[88].mxu1  ;;  %v1439_v53 = vpop.f32.mrb[88].mxu0 }
 0x21f   : > { %1552 = vst [vmem:[%s2730_s20 + $0xd8] sm:$0xff] %v1520_v35  ;;  %v958_v50 = vadd.f32 %v957_v36, %v2710_v58  ;;  %v959_v29 = vpop.f32.mrb[89].mxu1  ;;  %v1441_v18 = vpop.f32.mrb[89].mxu0 }
 0x220   : > { %v960_v9 = vpop.f32.mrb[90].mxu1  ;;  %v1442_v39 = vpop.f32.mrb[90].mxu0 }
 0x221   : > { %v1482_v54 = vadd.f32 %v1439_v53, %v958_v50  ;;  %v961_v40 = vadd.f32 %v960_v9, %v2714_v62  ;;  %v962_v43 = vpop.f32.mrb[91].mxu1  ;;  %v1444_v22 = vpop.f32.mrb[91].mxu0 }
 0x223   : > { %v1521_v13 = vadd.f32 %v2726_v20, %v1482_v54  ;;  %v1483_v44 = vadd.f32 %v1442_v39, %v961_v40 }
 0x225   : > { %1553 = vst [vmem:[%s2730_s20 + $0xe0] sm:$0xff] %v1521_v13  ;;  %v1522_v47 = vadd.f32 %v2726_v20, %v1483_v44 }
 0x226   : > { %v965_v57 = vpop.f32.mrb[92].mxu1  ;;  %v1447_v48 = vpop.f32.mrb[92].mxu0 }
 0x227   : > { %1554 = vst [vmem:[%s2730_s20 + $0xe8] sm:$0xff] %v1522_v47  ;;  %v966_v58 = vadd.f32 %v965_v57, %v2718_v3  ;;  %v967_v33 = vpop.f32.mrb[93].mxu1  ;;  %v1449_v51 = vpop.f32.mrb[93].mxu0 }
 0x228   : > { %v968_v62 = vpop.f32.mrb[94].mxu1  ;;  %v1450_v52 = vpop.f32.mrb[94].mxu0 }
 0x229   : > { %v1484_v26 = vadd.f32 %v1447_v48, %v966_v58  ;;  %v969_v61 = vadd.f32 %v968_v62, %v2722_v8  ;;  %v970_v55 = vpop.f32.mrb[95].mxu1  ;;  %v1452_v56 = vpop.f32.mrb[95].mxu0 }
 0x22b   : > { %v1523_v37 = vadd.f32 %v2726_v20, %v1484_v26  ;;  %v1485_v30 = vadd.f32 %v1450_v52, %v969_v61 }
 0x22d   : > { %1555 = vst [vmem:[%s2730_s20 + $0xf0] sm:$0xff] %v1523_v37  ;;  %v1524_v3 = vadd.f32 %v2726_v20, %v1485_v30 }
 0x22f   : > { %1556 = vst [vmem:[%s2730_s20 + $0xf8] sm:$0xff] %v1524_v3 }
 0x230   : > { %2120 = shalt.err (!%p2117_p2)
}
 0x231   : > { %s2121_s17 = scalar_lea.hbm %s2827_s23, 4096  ;;  %s2125_s29 = scalar_lea.hbm %s2879_s3, 8192 }
 0x232   : > { %p2122_p13 = scmp.ne.s32.totalorder %s2827_s23, %s2121_s17  ;;  %p2126_p4 = scmp.lt.u32.totalorder %s2827_s23, %s2879_s3 }
 0x233   : > { %p2127_p5 = scmp.lt.u32.totalorder %s2125_s29, %s2121_s17  ;;  %p2129_p11 = scmp.lt.u32.totalorder %s2121_s17, %s2827_s23 }
 0x234   : > { %p2123_p6 = pnand %p2122_p13, %p2893_p0 }
 0x235   : > { %p2128_p8 = por %p2127_p5, %p2126_p4 }
 0x236   : > { %p2124_p10 = pneg %p2123_p6 }
 0x237   : > { %p2130_p1 = por %p2129_p11, %p2128_p8 }
 0x239   : > { %p2131_p3 = pnand %p2130_p1, %p2124_p10 }
 0x23b   : > { %2134 = shalt.err (!%p2131_p3)
}
 0x23c   : > { %s2188_s18 = smov 128   ;;  %s2189_s20 = smov 8  }
 0x23d   : > { %1867 = dma.vmem_to_hbm [thread:$0]  (%p2893_p0), %s2829_s24, 4096, %s2827_s23, %s1558_s6, %s2188_s18, %s2188_s18, %s2189_s20  }
 0x23e PF: > { %s1586_s11 = sand.u32 1, %s2165_s12   ;;  %p2894_p7 = scmp.ne.s32.totalorder %s2884_s19, 0 }
 0x23f   : > { %p2895_p9 = scmp.ge.s32.totalorder %s2177_s15, 2  ;;  %s1587_s27 = scalar_lea.sflag [#allocation4], %s1586_s11 }
 0x241   : > { %p1881_p12 = pnand %p2895_p9, %p2894_p7 }
 0x243   : > { %2160 = dma.done.wait (!%p1881_p12), %s1587_s27, 4096  }
 0x244   : > { %2162 = vsyncadd (!%p1881_p12), %s1587_s27, 4294963200  ;;  %p17_p2 = scmp.ge.s32.totalorder %s2321_s5, 4   ;;  %s2896_s12 = smov %s2169_s13 }
 0x245   : > { %s2897_s13 = smov %s2173_s14  ;;  %s2898_s14 = smov %s2337_s8 }
 0x246   : > { %s2899_s15 = smov %s2321_s5  ;;  %19 = sbr.rel (!%p17_p2) target bundleno = 6 (0x6), region = 87 }
 0x24d   :  { %1592 = vsyncpa [#allocation3], 1 }
 0x24e   :  { %1594 = vsyncpa [#allocation3 + $0x1], 1 }
 0x24f   :  { %1595 = vsyncpa [#allocation6], 1 }
 0x250   :  { %1596 = vsyncpa [#allocation4], 1 }
 0x251   :  { %1598 = vsyncpa [#allocation4 + $0x1], 1 }

</bundles_post_ra>
